<compile_context>
chip_gen: v5e
topology: v5e:2x2
jax: 0.10.0
libtpu: 0.0.40
codegen_flags: <defaults>
</compile_context>

<pallas_src>
import jax
import jax.numpy as jnp
from jax.experimental import pallas as pl
from jax.experimental.pallas import tpu as pltpu


def _round_up(x: int, m: int) -> int:
    return ((x + m - 1) // m) * m


def _fold_rows(x, rows=8):
    """(R, C) -> (rows, C) by summing row groups (sublane-tile aligned -> VPU adds)."""
    acc = x[:rows, :]
    for r in range(rows, x.shape[0], rows):
        acc = acc + x[r:r + rows, :]
    return acc


def _fold_cols(x, cols=128):
    """(R, C) -> (R, cols) by summing lane-tile-aligned column groups."""
    acc = x[:, :cols]
    for c in range(cols, x.shape[1], cols):
        acc = acc + x[:, c:c + cols]
    return acc


def _make_nll_kernel(tile_n: int, tile_c: int, strip: int):
    num_strips = tile_n // strip

    def kernel(prob_ref, weight_ref, target_ref, out_ref, acc_ref):
        # prob_ref:   (tile_n, tile_c) native dtype (bf16 stays bf16 through DMA)
        # weight_ref: (1, c_pad) f32, fully VMEM-resident
        # target_ref: (tile_n, 1) i32
        # out_ref:    (8, 128) f32 lane-dense partial per N tile
        # acc_ref:    (8, tile_c) f32 scratch, persists across the C sweep
        j = pl.program_id(1)  # reduction (C) axis, innermost

        @pl.when(j == 0)
        def _init():
            acc_ref[...] = jnp.zeros_like(acc_ref)

        col_base = j * tile_c
        # Column ids for ONE strip, built once per grid step (never a
        # full-tile iota; reused by every strip below).
        col_ids = jax.lax.broadcasted_iota(jnp.int32, (strip, tile_c), 1)

        # Statically-unrolled strip loop: upcast / compare / select one row
        # strip at a time so f32 temporaries stay small even with multi-MiB
        # input blocks (keeps VMEM low on v7x, avoids vreg spill).
        part = jnp.zeros((8, tile_c), jnp.float32)
        for s in range(num_strips):
            r0 = s * strip
            p = prob_ref[r0:r0 + strip, :].astype(jnp.float32)   # (strip, tile_c)
            t = target_ref[r0:r0 + strip, :] - col_base          # (strip, 1) local frame
            # SELECT (not mask*prob): garbage / -inf / NaN in ragged
            # boundary blocks can never leak into the sum.
            sel = jnp.where(col_ids == t, p, 0.0)
            part = part + _fold_rows(sel, 8)

        # Weight applied once per grid step on the folded (8, tile_c)
        # partial (exact: selection and row-fold are linear).  Weight is
        # resident; slice this C tile's window in place.
        w = weight_ref[:, pl.ds(pl.multiple_of(col_base, tile_c), tile_c)]
        acc_ref[...] += part * w

        # Cross-lane fold + lane-dense (8, 128) store once per N tile.
        @pl.when(j == pl.num_programs(1) - 1)
        def _finalize():
            out_ref[...] = _fold_cols(acc_ref[...], 128)

    return kernel


def nll_loss(prob: jax.Array, target: jax.Array, weight: jax.Array,
             *, tile_n: int | None = None, tile_c: int | None = None) -> jax.Array:
    """Pallas implementation of seqGAN NLLLoss.forward (reduction='sum')."""
    N, C = prob.shape
    itemsize = prob.dtype.itemsize

    # bf16 packs two rows per sublane ((16,128) native tile) -> 16-align rows.
    row_align = 16 if itemsize < 4 else 8
    if tile_n is None:
        tile_n = 512
    if tile_c is None:
        # ~4 MiB prob blocks: hide per-step overhead on all chips while the
        # strip loop keeps f32 temporaries small enough for v7x's 64 MiB VMEM.
        tile_c = 4096 if itemsize <= 2 else 2048

    tile_n = _round_up(min(tile_n, _round_up(N, row_align)), row_align)
    tile_c = _round_up(min(tile_c, _round_up(C, 128)), 128)

    grid_n = pl.cdiv(N, tile_n)
    grid_c = pl.cdiv(C, tile_c)
    n_pad = grid_n * tile_n
    c_pad = grid_c * tile_c

    # Row-strip size: largest power-of-two <= 64 dividing tile_n (>= row_align).
    strip = 64
    while tile_n % strip != 0:
        strip //= 2

    # prob is NOT padded (would cost a full extra HBM read+write).  Only the
    # tiny target / weight arrays are padded: padded target rows get -1
    # (match no column), padded weight columns are 0.
    target_p = target.astype(jnp.int32)
    if n_pad != N:
        target_p = jnp.pad(target_p, (0, n_pad - N), constant_values=-1)
    target_p = target_p.reshape(n_pad, 1)

    weight_p = weight.astype(jnp.float32).reshape(1, C)
    if c_pad != C:
        weight_p = jnp.pad(weight_p, ((0, 0), (0, c_pad - C)))

    kernel = _make_nll_kernel(tile_n, tile_c, strip)

    partials = pl.pallas_call(
        kernel,
        out_shape=jax.ShapeDtypeStruct((grid_n * 8, 128), jnp.float32),
        grid_spec=pltpu.PrefetchScalarGridSpec(
            num_scalar_prefetch=0,
            grid=(grid_n, grid_c),  # reduction (C) axis last
            in_specs=[
                pl.BlockSpec((tile_n, tile_c), lambda i, j: (i, j)),  # prob (native dtype)
                pl.BlockSpec((1, c_pad), lambda i, j: (0, 0)),        # weight, VMEM-resident
                pl.BlockSpec((tile_n, 1), lambda i, j: (i, 0)),       # target
            ],
            out_specs=pl.BlockSpec((8, 128), lambda i, j: (i, 0)),
            scratch_shapes=[pltpu.VMEM((8, tile_c), jnp.float32)],
        ),
        compiler_params=pltpu.CompilerParams(
            # N tiles are independent -> shard across TensorCores on v7x;
            # C is the carried reduction.
            dimension_semantics=("parallel", "arbitrary"),
            # Usage with default tiles is ~12-14 MiB; 48 MiB cap leaves
            # double-buffering headroom yet stays inside v7x's 64 MiB VMEM.
            vmem_limit_bytes=48 * 1024 * 1024,
        ),
        cost_estimate=pl.CostEstimate(
            flops=2 * N * C,
            transcendentals=0,
            bytes_accessed=N * C * itemsize + n_pad * 4 + c_pad * 4
            + grid_n * 8 * 128 * 4,
        ),
    )(prob, weight_p, target_p)

    # TODO(synk): for vocab-scale C (>=16-32k classes) restructure to a
    # scalar-prefetch gather of only the target lane-tile per row, cutting
    # HBM traffic by ~C/128x; streaming the full matrix is only the right
    # regime for small/medium C.
    return -jnp.sum(partials)


if __name__ == "__main__":
    key = jax.random.PRNGKey(0)
    k1, k2, k3, k4, k5, k6, k7, k8, k9 = jax.random.split(key, 9)

    # --- 1) module-natural small f32 shapes (single tile) ---
    N, C = 8, 16
    prob = jax.nn.log_softmax(jax.random.normal(k1, (N, C), jnp.float32), axis=-1)
    weight = jax.random.uniform(k2, (C,), jnp.float32, minval=0.5, maxval=1.5)
    target = jax.random.randint(k3, (N,), 0, C, dtype=jnp.int32)

    loss = nll_loss(prob, target, weight)
    jax.block_until_ready(loss)
    ref = -jnp.sum(weight[target] * prob[jnp.arange(N), target])
    assert jnp.allclose(loss, ref, rtol=1e-5, atol=1e-5), (loss, ref)

    # --- 2) bf16 input, ragged shapes, forced small tiles: exercises the
    #        multi-tile grid, ragged boundary blocks in both axes (prob is
    #        NOT padded), and the resident cross-C accumulator ---
    N2, C2 = 21, 300
    prob2 = jax.nn.log_softmax(
        jax.random.normal(k4, (N2, C2), jnp.float32), axis=-1).astype(jnp.bfloat16)
    weight2 = jax.random.uniform(k5, (C2,), jnp.float32, minval=0.5, maxval=1.5)
    target2 = jax.random.randint(k6, (N2,), 0, C2, dtype=jnp.int32)

    loss2 = nll_loss(prob2, target2, weight2, tile_n=8, tile_c=128)
    jax.block_until_ready(loss2)
    p2f = prob2.astype(jnp.float32)
    ref2 = -jnp.sum(weight2[target2] * p2f[jnp.arange(N2), target2])
    assert jnp.allclose(loss2, ref2, rtol=1e-5, atol=1e-4), (loss2, ref2)

    # --- 3) f32 ragged shapes exercising the in-kernel strip loop
    #        (2 strips per block) and multi-C-tile accumulation ---
    N3, C3 = 200, 530
    prob3 = jax.nn.log_softmax(jax.random.normal(k7, (N3, C3), jnp.float32), axis=-1)
    weight3 = jax.random.uniform(k8, (C3,), jnp.float32, minval=0.5, maxval=1.5)
    target3 = jax.random.randint(k9, (N3,), 0, C3, dtype=jnp.int32)

    loss3 = nll_loss(prob3, target3, weight3, tile_n=128, tile_c=256)
    jax.block_until_ready(loss3)
    ref3 = -jnp.sum(weight3[target3] * prob3[jnp.arange(N3), target3])
    assert jnp.allclose(loss3, ref3, rtol=1e-5, atol=1e-4), (loss3, ref3)

    print("KERNEL_OK")
</pallas_src>

<mosaic_0001>
module attributes {stable_mosaic.version = 11 : i64} {
  func.func @kernel(%arg0: i32, %arg1: i32, %arg2: memref<8x128xf32, #tpu.memory_space<vmem>>, %arg3: memref<1x128xf32, #tpu.memory_space<vmem>>, %arg4: memref<8x1xi32, #tpu.memory_space<vmem>>, %arg5: memref<8x128xf32, #tpu.memory_space<vmem>>, %arg6: memref<8x128xf32, #tpu.memory_space<vmem>>) attributes {dimension_semantics = [#tpu.dimension_semantics<parallel>, #tpu.dimension_semantics<arbitrary>], iteration_bounds = array<i64: 1, 1>, scalar_prefetch = 0 : i64, scratch_operands = 1 : i64, tpu.core_type = #tpu.core_type<tc>, window_params = [{transform_indices = @transform_0, window_bounds = array<i64: 8, 128>}, {pipeline_mode = #tpu.pipeline_mode<synchronous>, transform_indices = @transform_1, window_bounds = array<i64: 1, 128>}, {transform_indices = @transform_2, window_bounds = array<i64: 8, 1>}, {transform_indices = @transform_3, window_bounds = array<i64: 8, 128>}]} {
    %c0_i32 = arith.constant 0 : i32
    %0 = arith.cmpi eq, %arg1, %c0_i32 : i32
    %1 = arith.extui %0 : i1 to i32
    %c0_i32_0 = arith.constant 0 : i32
    %2 = arith.cmpi ne, %1, %c0_i32_0 : i32
    scf.if %2 {
      %cst_12 = arith.constant 0.000000e+00 : f32
      %26 = vector.broadcast %cst_12 : f32 to vector<8x128xf32>
      %c0_13 = arith.constant 0 : index
      %c0_14 = arith.constant 0 : index
      %27 = vector.load %arg6[%c0_13, %c0_14] : memref<8x128xf32, #tpu.memory_space<vmem>>, vector<8x128xf32>
      tpu.vector_store %arg6[%c0_13, %c0_14], %26 {strides = array<i32>} : memref<8x128xf32, #tpu.memory_space<vmem>>, vector<8x128xf32>,
    } else {
    }
    %c128_i32 = arith.constant 128 : i32
    %3 = arith.muli %arg1, %c128_i32 : i32
    %4 = tpu.iota {dimensions = array<i32: 1>} : vector<8x128xi32>
    %cst = arith.constant 0.000000e+00 : f32
    %5 = vector.broadcast %cst : f32 to vector<8x128xf32>
    %c0 = arith.constant 0 : index
    %c0_1 = arith.constant 0 : index
    %6 = vector.load %arg2[%c0, %c0_1] : memref<8x128xf32, #tpu.memory_space<vmem>>, vector<8x128xf32>
    %c0_2 = arith.constant 0 : index
    %c0_3 = arith.constant 0 : index
    %7 = vector.load %arg4[%c0_2, %c0_3] : memref<8x1xi32, #tpu.memory_space<vmem>>, vector<8x1xi32>
    %8 = vector.broadcast %3 : i32 to vector<8x1xi32>
    %9 = arith.subi %7, %8 : vector<8x1xi32>
    %10 = vector.broadcast %9 : vector<8x1xi32> to vector<8x128xi32>
    %11 = arith.cmpi eq, %4, %10 : vector<8x128xi32>
    %cst_4 = arith.constant 0.000000e+00 : f32
    %12 = vector.broadcast %cst_4 : f32 to vector<8x128xf32>
    %13 = arith.select %11, %6, %12 : vector<8x128xi1>, vector<8x128xf32>
    %14 = arith.addf %5, %13 : vector<8x128xf32>
    %15 = tpu.assume_multiple %3, 128 : i32
    %c0_5 = arith.constant 0 : index
    %16 = arith.index_cast %15 : i32 to index
    %17 = vector.load %arg3[%c0_5, %16] : memref<1x128xf32, #tpu.memory_space<vmem>>, vector<1x128xf32>
    %c0_6 = arith.constant 0 : index
    %c0_7 = arith.constant 0 : index
    %18 = vector.load %arg6[%c0_6, %c0_7] : memref<8x128xf32, #tpu.memory_space<vmem>>, vector<8x128xf32>
    %19 = vector.broadcast %17 : vector<1x128xf32> to vector<8x128xf32>
    %20 = arith.mulf %14, %19 : vector<8x128xf32>
    %21 = arith.addf %18, %20 : vector<8x128xf32>
    %c0_8 = arith.constant 0 : index
    %c0_9 = arith.constant 0 : index
    %22 = vector.load %arg6[%c0_8, %c0_9] : memref<8x128xf32, #tpu.memory_space<vmem>>, vector<8x128xf32>
    tpu.vector_store %arg6[%c0_8, %c0_9], %21 {strides = array<i32>} : memref<8x128xf32, #tpu.memory_space<vmem>>, vector<8x128xf32>,
    %c0_i32_10 = arith.constant 0 : i32
    %23 = arith.cmpi eq, %arg1, %c0_i32_10 : i32
    %24 = arith.extui %23 : i1 to i32
    %c0_i32_11 = arith.constant 0 : i32
    %25 = arith.cmpi ne, %24, %c0_i32_11 : i32
    scf.if %25 {
      %c0_12 = arith.constant 0 : index
      %c0_13 = arith.constant 0 : index
      %26 = vector.load %arg6[%c0_12, %c0_13] : memref<8x128xf32, #tpu.memory_space<vmem>>, vector<8x128xf32>
      %c0_14 = arith.constant 0 : index
      %c0_15 = arith.constant 0 : index
      %27 = vector.load %arg5[%c0_14, %c0_15] : memref<8x128xf32, #tpu.memory_space<vmem>>, vector<8x128xf32>
      tpu.vector_store %arg5[%c0_14, %c0_15], %26 {strides = array<i32>} : memref<8x128xf32, #tpu.memory_space<vmem>>, vector<8x128xf32>,
    } else {
    }
    return
  }
  func.func @transform_0(%arg0: i32, %arg1: i32) -> (i32, i32) {
    %c0_i32 = arith.constant 0 : i32
    return %arg0, %arg1 : i32, i32
  }
  func.func @transform_1(%arg0: i32, %arg1: i32) -> (i32, i32) {
    %c0_i32 = arith.constant 0 : i32
    %c0_i32_0 = arith.constant 0 : i32
    %c0_i32_1 = arith.constant 0 : i32
    return %c0_i32, %c0_i32_0 : i32, i32
  }
  func.func @transform_2(%arg0: i32, %arg1: i32) -> (i32, i32) {
    %c0_i32 = arith.constant 0 : i32
    %c0_i32_0 = arith.constant 0 : i32
    return %arg0, %c0_i32 : i32, i32
  }
  func.func @transform_3(%arg0: i32, %arg1: i32) -> (i32, i32) {
    %c0_i32 = arith.constant 0 : i32
    %c0_i32_0 = arith.constant 0 : i32
    return %arg0, %c0_i32 : i32, i32
  }
}

</mosaic_0001>

<bundles_post_ra>
// kernel: tpu_custom_call.1
= control target key start
LH: loop header
LB: loop body
LE: loop exit
PB: predicated region body
PF: predicated region fallthrough
CT: control target
= control target key end

     0   :  { %v96_v1 = vmov 0   ;;  %s130_s0 = inlined_call_operand.vmem [shape: f32[8,16], index: 0, kind: input, shape index: {}]   ;;  %s131_s1 = inlined_call_operand.vmem [shape: f32[1,128], index: 1, kind: input, shape index: {}]   ;;  %s132_s2 = inlined_call_operand.vmem [shape: s32[8,1], index: 2, kind: input, shape index: {}]   ;;  %s133_s3 = inlined_call_operand.hbm [shape: f32[8,128], index: 3, kind: output, shape index: {}]  }
   0x1   :  { %v24_v0 = vld [vmem:[%s132_s2] sm:$0xff]  ;;  %68 = vset.pattern.permute.xlu0 %v96_v1 }
   0x2   :  { %8 = vsyncpa [#allocation4], 0  ;;  %28 = vperm.xlu0 %68, %v24_v0   ;;  %v21_v2 = vlaneseq  ;;  %v69_v4 = vld [vmem:[%s131_s1] ss:$0 sm:$0xff]  ;;  %s97_s18 = smov [#allocation3]   ;;  %s56_s2 = sshll.u32 %s133_s3, 4  ;;  %s57_s2 = int_to_ptr.hbm [resolvable:$true] %s56_s2 }
   0x3   :  { %v23_v5 = vld [vmem:[%s130_s0] sm:$0xff]  ;;  %s54_s19 = sshll.u32 %s97_s18, 4  ;;  %s55_s19 = int_to_ptr.vmem [resolvable:$true] %s54_s19 }
   0x4   :  { %v22_v3 = vand.u32 127, %v21_v2 }
  0x74   :  { %v29_v6 = vpop.permute.xlu0 %28 }
  0x75   :  { %vm30_vm0 = vcmp.eq.s32.totalorder %v22_v3, %v29_v6 }
  0x76   :  { %v31_v7 = vsel %vm30_vm0, %v23_v5, 0.0 }
  0x77   :  { %v41_v8 = vmul.f32 %v69_v4, %v31_v7 }
  0x79   :  { %48 = vst [vmem:[#allocation3] sm:$0xff] %v41_v8 }
  0x7a   :  { %59 = dma.vmem_to_hbm [thread:$0]  %s55_s19, 128, %s57_s2, [#allocation4]  }
  0x7b   :  { %94 = dma.done.wait [#allocation4], 128  }
  0x7c   :  { %95 = vsyncadd [#allocation4], 4294967168 }
  0x7d   :  { %64 = vsyncpa [#allocation4], 1 }

</bundles_post_ra>
